<compile_context>
chip_gen: v6e
topology: v6e:2x2x1
jax: 0.10.0
libtpu: 0.0.40
codegen_flags: <defaults>
</compile_context>

<pallas_src>
import functools
from typing import NamedTuple, Tuple

import jax
import jax.numpy as jnp
from jax.experimental import pallas as pl
from jax.experimental.pallas import tpu as pltpu

H = 32            # SAGEConv out_channels
H_PAD = 128       # lane-padded output width (sliced back to H at the very end)
LANE = 128
TM_MAX = 256      # dst-row tile (256-wide MXU on v6e/v7x; fine on v5e)
TK_MAX = 2048     # src/contraction tile
VMEM_LIMIT = 32 * 1024 * 1024   # explicit scoped-VMEM budget (safe on v5e/v6e/v7x)


def _round_up(n, m):
    return ((n + m - 1) // m) * m


def _pad2d(x, rows, cols):
    r, c = x.shape
    return jnp.pad(x, ((0, rows - r), (0, cols - c)))


def _sublane(dtype):
    # packing-aware second-minor tile multiple: f32 -> 8, bf16 -> 16, int8/fp8 -> 32
    return {4: 8, 2: 16, 1: 32}[jnp.dtype(dtype).itemsize]


# --------------------------------------------------------------------------
# Pallas kernel: one hetero SAGE layer for one destination node type.
# --------------------------------------------------------------------------
def _sage_layer_kernel(a_ref, xw_ref, xd_ref, wr_ref, b_ref, o_ref, acc_ref, *, relu):
    """Grid = (dst-row tiles [parallel], src/contraction tiles [arbitrary]).

    acc (f32, (tm, H_PAD)) accumulates A_tile @ (X W_l)_tile across k;
    finalize adds the root term x_dst @ W_r_sum + b and the optional relu.
    """
    k = pl.program_id(1)

    part = jnp.dot(a_ref[...], xw_ref[...], preferred_element_type=jnp.float32)

    @pl.when(k == 0)
    def _first():                 # overwrite on first k step: no explicit zero-init
        acc_ref[...] = part

    @pl.when(k > 0)
    def _accum():
        acc_ref[...] += part

    @pl.when(k == pl.num_programs(1) - 1)
    def _finalize():
        out = acc_ref[...] + jnp.dot(xd_ref[...], wr_ref[...],
                                     preferred_element_type=jnp.float32) + b_ref[...]
        if relu:
            out = jnp.maximum(out, 0.0)
        o_ref[...] = out.astype(o_ref.dtype)


# --------------------------------------------------------------------------
# Parameter-independent graph prep (hoisted out of the forward hot path).
# --------------------------------------------------------------------------
class DstGraph(NamedTuple):
    a_cat: jax.Array            # [n_dst_pad, n_src_pad] mean-aggr adjacency (streaming dtype)
    n_dst: int
    src_sizes: Tuple[int, ...]  # per-edge-type source node counts (column order of a_cat)
    n_src_pad: int
    tm: int
    tk: int


def build_mean_adj(edge_index, n_src, n_dst):
    src, dst = edge_index[0], edge_index[1]
    a = jnp.zeros((n_dst, n_src), jnp.float32).at[dst, src].add(1.0)
    deg = a.sum(axis=1, keepdims=True)
    return jnp.where(deg > 0, a / jnp.maximum(deg, 1.0), 0.0)


def prepare_dst_graph(edge_indices, n_srcs, n_dst, compute_dtype=jnp.bfloat16):
    """Build the dense mean-aggregation adjacencies for all edge types into one dst type,
    concatenate along the source axis, pad to tile geometry and cast to the streaming
    dtype ONCE (parameter independent, reused by both layers).

    NOTE: bf16 A bounds each 1/deg entry to ~2^-8 relative error; pass
    compute_dtype=jnp.float32 if node degrees are high enough for that to matter.
    """
    adjs = [build_mean_adj(ei, ns, n_dst) for ei, ns in zip(edge_indices, n_srcs)]
    n_src_total = sum(n_srcs)

    tk = min(TK_MAX, _round_up(n_src_total, LANE))
    n_src_pad = _round_up(n_src_total, tk)

    sub = _sublane(compute_dtype)
    tm_full = _round_up(n_dst, sub)
    if tm_full <= TM_MAX and tm_full >= 2 * sub:
        # keep >=2 dst-row tiles so the "parallel" axis spreads across v7x's 2 TensorCores
        tm = _round_up(-(-n_dst // 2), sub)
    else:
        tm = min(TM_MAX, tm_full)
    n_dst_pad = _round_up(n_dst, tm)

    a_cat = _pad2d(jnp.concatenate(adjs, axis=1), n_dst_pad, n_src_pad)
    return DstGraph(a_cat.astype(compute_dtype), n_dst, tuple(n_srcs), n_src_pad, tm, tk)


# --------------------------------------------------------------------------
# One hetero SAGE layer: sum of SAGEConvs over several edge types into one dst type.
# --------------------------------------------------------------------------
def hetero_sage_layer(graph, x_srcs, wls, x_dst, wrs, bs, *, relu, out_dtype,
                      compute_dtype=jnp.bfloat16):
    """Project-first formulation.

    graph     : DstGraph (prepared once; a_cat column order == x_srcs order)
    x_srcs[e] : [n_src_e, f_e]     source features (may be lane-padded; only the first
                                   wls[e].shape[0] columns are used)
    wls[e]    : [f_wl_e, H]        neighbour weights (applied BEFORE aggregation)
    x_dst     : [n_dst, f_dst]
    wrs[e]    : [f_wr_e, H]        root weights (summed across edge types)
    bs[e]     : [1, H]             biases (summed across edge types)

    Returns [n_dst_pad, H_PAD] in out_dtype; caller slices [:n_dst] (lanes H: stay zero).
    """
    assert tuple(x.shape[0] for x in x_srcs) == graph.src_sizes
    n_dst_pad, n_src_pad = graph.a_cat.shape
    tm, tk = graph.tm, graph.tk

    hi = jax.lax.Precision.HIGHEST
    # tiny pre-pass: per-edge-type x_e @ W_l_e  (negligible vs A traffic)
    xw_list = []
    for x_e, wl_e in zip(x_srcs, wls):
        f_w = wl_e.shape[0]
        xw_list.append(jnp.dot(x_e[:, :f_w].astype(jnp.float32), wl_e, precision=hi))
    xw_cat = jnp.concatenate(xw_list, axis=0).astype(compute_dtype)     # [n_src_total, H]
    xw_cat = _pad2d(xw_cat, n_src_pad, H_PAD)

    f_dst = x_dst.shape[1]
    f_dst_pad = _round_up(f_dst, LANE)
    xd_pad = _pad2d(x_dst, n_dst_pad, f_dst_pad).astype(compute_dtype)

    # W_r / bias folding is valid because all edge types into this dst type share x_dst.
    wr_sum = sum(wrs)
    b_sum = sum(bs)
    wr_pad = _pad2d(wr_sum, f_dst_pad, H_PAD).astype(compute_dtype)
    b_pad = _pad2d(b_sum.astype(jnp.float32), 1, H_PAD)

    grid = (n_dst_pad // tm, n_src_pad // tk)
    kernel = functools.partial(_sage_layer_kernel, relu=relu)

    return pl.pallas_call(
        kernel,
        out_shape=jax.ShapeDtypeStruct((n_dst_pad, H_PAD), out_dtype),
        grid=grid,
        in_specs=[
            pl.BlockSpec((tm, tk), lambda i, k: (i, k)),             # A_cat
            pl.BlockSpec((tk, H_PAD), lambda i, k: (k, 0)),          # XW_cat (project-first)
            pl.BlockSpec((tm, f_dst_pad), lambda i, k: (i, 0)),      # x_dst
            pl.BlockSpec((f_dst_pad, H_PAD), lambda i, k: (0, 0)),   # W_r_sum
            pl.BlockSpec((1, H_PAD), lambda i, k: (0, 0)),           # bias
        ],
        out_specs=pl.BlockSpec((tm, H_PAD), lambda i, k: (i, 0)),
        scratch_shapes=[pltpu.VMEM((tm, H_PAD), jnp.float32)],
        compiler_params=pltpu.CompilerParams(
            dimension_semantics=("parallel", "arbitrary"),
            vmem_limit_bytes=VMEM_LIMIT),
    )(graph.a_cat, xw_cat, xd_pad, wr_pad, b_pad)


# --------------------------------------------------------------------------
# Parameters
# --------------------------------------------------------------------------
def init_sage_params(key, f_src, f_dst, scale=0.1):
    k1, k2, k3 = jax.random.split(key, 3)
    # Stored pre-transposed: W_l -> [f_src, H], W_r -> [f_dst, H]; bias (only on lin_l) -> [1, H]
    wl = scale * jax.random.normal(k1, (f_src, H), jnp.float32)
    wr = scale * jax.random.normal(k2, (f_dst, H), jnp.float32)
    b = scale * jax.random.normal(k3, (1, H), jnp.float32)
    return wl, wr, b


# --------------------------------------------------------------------------
# HeteroSAGE forward
# metadata = (['paper', 'author'],
#             [('paper','to','paper'), ('author','to','paper'), ('paper','to','author')])
# --------------------------------------------------------------------------
def prepare_graphs(edge_index_dict, n_paper, n_author, compute_dtype=jnp.bfloat16):
    return {
        'paper': prepare_dst_graph(
            [edge_index_dict[('paper', 'to', 'paper')],
             edge_index_dict[('author', 'to', 'paper')]],
            [n_paper, n_author], n_paper, compute_dtype=compute_dtype),
        'author': prepare_dst_graph(
            [edge_index_dict[('paper', 'to', 'author')]],
            [n_paper], n_author, compute_dtype=compute_dtype),
    }


def hetero_sage_forward(x_dict, graphs, params, additional_arg=None,
                        compute_dtype=jnp.bfloat16):
    assert additional_arg is not None
    x_p, x_a = x_dict['paper'], x_dict['author']
    n_p, n_a = x_p.shape[0], x_a.shape[0]
    g_paper, g_author = graphs['paper'], graphs['author']
    p1, p2 = params['layer1'], params['layer2']

    # Layer 1 (relu fused in-kernel):
    #   paper  <- {paper->paper, author->paper}   (summed inside one call)
    #   author <- {paper->author}
    # Intermediates are emitted directly in the streaming dtype and kept 128-lane.
    h_p = hetero_sage_layer(g_paper, [x_p, x_a],
                            [p1['pp'][0], p1['ap'][0]],
                            x_p, [p1['pp'][1], p1['ap'][1]], [p1['pp'][2], p1['ap'][2]],
                            relu=True, out_dtype=compute_dtype,
                            compute_dtype=compute_dtype)[:n_p]
    h_a = hetero_sage_layer(g_author, [x_p], [p1['pa'][0]],
                            x_a, [p1['pa'][1]], [p1['pa'][2]],
                            relu=True, out_dtype=compute_dtype,
                            compute_dtype=compute_dtype)[:n_a]

    # Layer 2: forward returns only 'paper', so the layer-2 'author' branch is dead code.
    # TODO(synk): fuse layer1+layer2 into one pallas_call (A_cat streamed once) and use a
    #             CSR scalar-prefetch gather for large sparse graphs.
    out_p = hetero_sage_layer(g_paper, [h_p, h_a],
                              [p2['pp'][0], p2['ap'][0]],
                              h_p, [p2['pp'][1], p2['ap'][1]], [p2['pp'][2], p2['ap'][2]],
                              relu=False, out_dtype=jnp.float32,
                              compute_dtype=compute_dtype)
    return out_p[:n_p, :H]


# --------------------------------------------------------------------------
# Pure-JAX f32 reference (same math, no Pallas) for correctness checks.
# --------------------------------------------------------------------------
def _sage_ref(a, xs, wl, wr, b, xd):
    hi = jax.lax.Precision.HIGHEST
    return (jnp.dot(jnp.dot(a, xs, precision=hi), wl, precision=hi)
            + jnp.dot(xd, wr, precision=hi) + b)


def hetero_sage_ref(x_dict, edge_index_dict, params):
    x_p, x_a = x_dict['paper'], x_dict['author']
    n_p, n_a = x_p.shape[0], x_a.shape[0]
    a_pp = build_mean_adj(edge_index_dict[('paper', 'to', 'paper')], n_p, n_p)
    a_ap = build_mean_adj(edge_index_dict[('author', 'to', 'paper')], n_a, n_p)
    a_pa = build_mean_adj(edge_index_dict[('paper', 'to', 'author')], n_p, n_a)
    p1, p2 = params['layer1'], params['layer2']
    h_p = jax.nn.relu(_sage_ref(a_pp, x_p, *p1['pp'], x_p) +
                      _sage_ref(a_ap, x_a, *p1['ap'], x_p))
    h_a = jax.nn.relu(_sage_ref(a_pa, x_p, *p1['pa'], x_a))
    return (_sage_ref(a_pp, h_p, *p2['pp'], h_p) +
            _sage_ref(a_ap, h_a, *p2['ap'], h_p))


# --------------------------------------------------------------------------
if __name__ == "__main__":
    key = jax.random.PRNGKey(0)
    kx1, kx2, ke1, ke2, ke3, kw = jax.random.split(key, 6)

    n_paper, n_author = 8, 10
    f_paper, f_author = 16, 8
    n_edges = 10

    x_dict = {
        'paper': jax.random.normal(kx1, (n_paper, f_paper), jnp.float32),
        'author': jax.random.normal(kx2, (n_author, f_author), jnp.float32),
    }
    edge_index_dict = {
        ('paper', 'to', 'paper'): jnp.stack([
            jax.random.randint(ke1, (n_edges,), 0, n_paper),
            jax.random.randint(jax.random.fold_in(ke1, 1), (n_edges,), 0, n_paper)]),
        ('author', 'to', 'paper'): jnp.stack([
            jax.random.randint(ke2, (n_edges,), 0, n_author),
            jax.random.randint(jax.random.fold_in(ke2, 1), (n_edges,), 0, n_paper)]),
        ('paper', 'to', 'author'): jnp.stack([
            jax.random.randint(ke3, (n_edges,), 0, n_paper),
            jax.random.randint(jax.random.fold_in(ke3, 1), (n_edges,), 0, n_author)]),
    }

    kw1, kw2, kw3, kw4, kw5 = jax.random.split(kw, 5)
    params = {
        'layer1': {
            'pp': init_sage_params(kw1, f_paper, f_paper),
            'ap': init_sage_params(kw2, f_author, f_paper),
            'pa': init_sage_params(kw3, f_paper, f_author),
        },
        'layer2': {
            'pp': init_sage_params(kw4, H, H),
            'ap': init_sage_params(kw5, H, H),
        },
    }

    ref = jax.block_until_ready(hetero_sage_ref(x_dict, edge_index_dict, params))

    # f32 compute path: tight check against the pure-JAX reference.
    graphs_f32 = prepare_graphs(edge_index_dict, n_paper, n_author,
                                compute_dtype=jnp.float32)
    out_f32 = hetero_sage_forward(x_dict, graphs_f32, params,
                                  additional_arg=object(),
                                  compute_dtype=jnp.float32)
    out_f32 = jax.block_until_ready(out_f32)
    assert out_f32.shape == (n_paper, H) and out_f32.dtype == jnp.float32
    assert bool(jnp.allclose(out_f32, ref, atol=1e-3, rtol=1e-3))

    # bf16 streaming path (default): relaxed tolerance vs f32 reference.
    graphs_bf16 = prepare_graphs(edge_index_dict, n_paper, n_author,
                                 compute_dtype=jnp.bfloat16)
    out_bf16 = hetero_sage_forward(x_dict, graphs_bf16, params,
                                   additional_arg=object(),
                                   compute_dtype=jnp.bfloat16)
    out_bf16 = jax.block_until_ready(out_bf16)
    assert out_bf16.shape == (n_paper, H) and out_bf16.dtype == jnp.float32
    assert bool(jnp.allclose(out_bf16, ref, atol=5e-2, rtol=5e-2))

    print("KERNEL_OK")
</pallas_src>

<mosaic_0001>
module attributes {stable_mosaic.version = 11 : i64} {
  func.func @_sage_layer_kernel(%arg0: i32, %arg1: i32, %arg2: memref<8x128xf32, #tpu.memory_space<vmem>>, %arg3: memref<128x128xf32, #tpu.memory_space<vmem>>, %arg4: memref<8x128xf32, #tpu.memory_space<vmem>>, %arg5: memref<128x128xf32, #tpu.memory_space<vmem>>, %arg6: memref<1x128xf32, #tpu.memory_space<vmem>>, %arg7: memref<8x128xf32, #tpu.memory_space<vmem>>, %arg8: memref<8x128xf32, #tpu.memory_space<vmem>>) attributes {dimension_semantics = [#tpu.dimension_semantics<parallel>, #tpu.dimension_semantics<arbitrary>], iteration_bounds = array<i64: 1, 1>, scalar_prefetch = 0 : i64, scratch_operands = 1 : i64, tpu.core_type = #tpu.core_type<tc>, window_params = [{transform_indices = @transform_0, window_bounds = array<i64: 8, 128>}, {transform_indices = @transform_1, window_bounds = array<i64: 128, 128>}, {transform_indices = @transform_2, window_bounds = array<i64: 8, 128>}, {pipeline_mode = #tpu.pipeline_mode<synchronous>, transform_indices = @transform_3, window_bounds = array<i64: 128, 128>}, {pipeline_mode = #tpu.pipeline_mode<synchronous>, transform_indices = @transform_4, window_bounds = array<i64: 1, 128>}, {transform_indices = @transform_5, window_bounds = array<i64: 8, 128>}]} {
    %c0 = arith.constant 0 : index
    %c0_0 = arith.constant 0 : index
    %0 = vector.load %arg2[%c0, %c0_0] : memref<8x128xf32, #tpu.memory_space<vmem>>, vector<8x128xf32>
    %c0_1 = arith.constant 0 : index
    %c0_2 = arith.constant 0 : index
    %1 = vector.load %arg3[%c0_1, %c0_2] : memref<128x128xf32, #tpu.memory_space<vmem>>, vector<128x128xf32>
    %cst = arith.constant dense<0.000000e+00> : vector<8x128xf32>
    %2 = tpu.matmul %0, %1, %cst {dimension_numbers = #tpu.dot_dimension_numbers<[1], [0], [0], [1], [0, 0, 1, 1], [], []>} : vector<8x128xf32>, vector<128x128xf32>, vector<8x128xf32> -> vector<8x128xf32>
    %c0_i32 = arith.constant 0 : i32
    %3 = arith.cmpi eq, %arg1, %c0_i32 : i32
    %4 = arith.extui %3 : i1 to i32
    %c0_i32_3 = arith.constant 0 : i32
    %5 = arith.cmpi ne, %4, %c0_i32_3 : i32
    scf.if %5 {
      %c0_8 = arith.constant 0 : index
      %c0_9 = arith.constant 0 : index
      %12 = vector.load %arg8[%c0_8, %c0_9] : memref<8x128xf32, #tpu.memory_space<vmem>>, vector<8x128xf32>
      tpu.vector_store %arg8[%c0_8, %c0_9], %2 {strides = array<i32>} : memref<8x128xf32, #tpu.memory_space<vmem>>, vector<8x128xf32>,
    } else {
    }
    %c0_i32_4 = arith.constant 0 : i32
    %6 = arith.cmpi sgt, %arg1, %c0_i32_4 : i32
    %7 = arith.extui %6 : i1 to i32
    %c0_i32_5 = arith.constant 0 : i32
    %8 = arith.cmpi ne, %7, %c0_i32_5 : i32
    scf.if %8 {
      %c0_8 = arith.constant 0 : index
      %c0_9 = arith.constant 0 : index
      %12 = vector.load %arg8[%c0_8, %c0_9] : memref<8x128xf32, #tpu.memory_space<vmem>>, vector<8x128xf32>
      %13 = arith.addf %12, %2 : vector<8x128xf32>
      %c0_10 = arith.constant 0 : index
      %c0_11 = arith.constant 0 : index
      %14 = vector.load %arg8[%c0_10, %c0_11] : memref<8x128xf32, #tpu.memory_space<vmem>>, vector<8x128xf32>
      tpu.vector_store %arg8[%c0_10, %c0_11], %13 {strides = array<i32>} : memref<8x128xf32, #tpu.memory_space<vmem>>, vector<8x128xf32>,
    } else {
    }
    %c0_i32_6 = arith.constant 0 : i32
    %9 = arith.cmpi eq, %arg1, %c0_i32_6 : i32
    %10 = arith.extui %9 : i1 to i32
    %c0_i32_7 = arith.constant 0 : i32
    %11 = arith.cmpi ne, %10, %c0_i32_7 : i32
    scf.if %11 {
      %c0_8 = arith.constant 0 : index
      %c0_9 = arith.constant 0 : index
      %12 = vector.load %arg8[%c0_8, %c0_9] : memref<8x128xf32, #tpu.memory_space<vmem>>, vector<8x128xf32>
      %c0_10 = arith.constant 0 : index
      %c0_11 = arith.constant 0 : index
      %13 = vector.load %arg4[%c0_10, %c0_11] : memref<8x128xf32, #tpu.memory_space<vmem>>, vector<8x128xf32>
      %c0_12 = arith.constant 0 : index
      %c0_13 = arith.constant 0 : index
      %14 = vector.load %arg5[%c0_12, %c0_13] : memref<128x128xf32, #tpu.memory_space<vmem>>, vector<128x128xf32>
      %cst_14 = arith.constant dense<0.000000e+00> : vector<8x128xf32>
      %15 = tpu.matmul %13, %14, %cst_14 {dimension_numbers = #tpu.dot_dimension_numbers<[1], [0], [0], [1], [0, 0, 1, 1], [], []>} : vector<8x128xf32>, vector<128x128xf32>, vector<8x128xf32> -> vector<8x128xf32>
      %16 = arith.addf %12, %15 : vector<8x128xf32>
      %c0_15 = arith.constant 0 : index
      %c0_16 = arith.constant 0 : index
      %17 = vector.load %arg6[%c0_15, %c0_16] : memref<1x128xf32, #tpu.memory_space<vmem>>, vector<1x128xf32>
      %18 = vector.broadcast %17 : vector<1x128xf32> to vector<8x128xf32>
      %19 = arith.addf %16, %18 : vector<8x128xf32>
      %cst_17 = arith.constant 0.000000e+00 : f32
      %20 = vector.broadcast %cst_17 : f32 to vector<8x128xf32>
      %21 = arith.maximumf %19, %20 : vector<8x128xf32>
      %c0_18 = arith.constant 0 : index
      %c0_19 = arith.constant 0 : index
      %22 = vector.load %arg7[%c0_18, %c0_19] : memref<8x128xf32, #tpu.memory_space<vmem>>, vector<8x128xf32>
      tpu.vector_store %arg7[%c0_18, %c0_19], %21 {strides = array<i32>} : memref<8x128xf32, #tpu.memory_space<vmem>>, vector<8x128xf32>,
    } else {
    }
    return
  }
  func.func @transform_0(%arg0: i32, %arg1: i32) -> (i32, i32) {
    %c0_i32 = arith.constant 0 : i32
    return %arg0, %arg1 : i32, i32
  }
  func.func @transform_1(%arg0: i32, %arg1: i32) -> (i32, i32) {
    %c0_i32 = arith.constant 0 : i32
    %c0_i32_0 = arith.constant 0 : i32
    return %arg1, %c0_i32 : i32, i32
  }
  func.func @transform_2(%arg0: i32, %arg1: i32) -> (i32, i32) {
    %c0_i32 = arith.constant 0 : i32
    %c0_i32_0 = arith.constant 0 : i32
    return %arg0, %c0_i32 : i32, i32
  }
  func.func @transform_3(%arg0: i32, %arg1: i32) -> (i32, i32) {
    %c0_i32 = arith.constant 0 : i32
    %c0_i32_0 = arith.constant 0 : i32
    %c0_i32_1 = arith.constant 0 : i32
    return %c0_i32, %c0_i32_0 : i32, i32
  }
  func.func @transform_4(%arg0: i32, %arg1: i32) -> (i32, i32) {
    %c0_i32 = arith.constant 0 : i32
    %c0_i32_0 = arith.constant 0 : i32
    %c0_i32_1 = arith.constant 0 : i32
    return %c0_i32, %c0_i32_0 : i32, i32
  }
  func.func @transform_5(%arg0: i32, %arg1: i32) -> (i32, i32) {
    %c0_i32 = arith.constant 0 : i32
    %c0_i32_0 = arith.constant 0 : i32
    return %arg0, %c0_i32 : i32, i32
  }
}

</mosaic_0001>

<bundles_post_ra>
// kernel: tpu_custom_call.1
= control target key start
LH: loop header
LB: loop body
LE: loop exit
PB: predicated region body
PF: predicated region fallthrough
CT: control target
= control target key end

     0   :  { %10 = vsyncpa [#allocation4], 0  ;;  %s609_s0 = inlined_call_operand.hbm [shape: f32[8,128], index: 0, kind: input, shape index: {}]   ;;  %s610_s1 = inlined_call_operand.hbm [shape: f32[128,128], index: 1, kind: input, shape index: {}]   ;;  %s611_s2 = inlined_call_operand.hbm [shape: f32[8,128], index: 2, kind: input, shape index: {}]   ;;  %s612_s3 = inlined_call_operand.hbm [shape: f32[128,128], index: 3, kind: input, shape index: {}]   ;;  %s613_s4 = inlined_call_operand.vmem [shape: f32[1,128], index: 4, kind: input, shape index: {}]   ;;  %s614_s5 = inlined_call_operand.hbm [shape: f32[8,128], index: 5, kind: output, shape index: {}]  }
   0x1   :  { %11 = vsyncpa [#allocation7], 0 }
   0x2   :  { %12 = vsyncpa [#allocation10], 0 }
   0x3   :  { %13 = vsyncpa [#allocation5], 0  ;;  %s512_s18 = smov [#allocation6]  }
   0x4   :  { %s29_s19 = sshll.u32 %s512_s18, 4  ;;  %s30_s19 = int_to_ptr.vmem [resolvable:$true] %s29_s19 }
   0x5   :  { %s412_s20 = scalar_lea.vmem %s30_s19, 2048  ;;  %p417_p1 = scmp.lt.s32.totalorder %s30_s19, %s30_s19 }
   0x6   :  { %p413_p0 = scmp.ne.s32.totalorder %s30_s19, %s412_s20  ;;  %p418_p2 = scmp.lt.s32.totalorder %s412_s20, %s412_s20 }
   0x8   :  { %p419_p3 = por %p418_p2, %p417_p1 }
   0xa   :  { %p420_p4 = pnand %p419_p3, %p413_p0 }
   0xc   :  { %423 = shalt.err (!%p420_p4)
}
   0xd   :  { %s513_s21 = smov 128   ;;  %s514_s22 = smov 8  }
   0xe   :  { %35 = dma.hbm_to_vmem [thread:$0]  %s610_s1, 2048, %s30_s19, [#allocation7], %s513_s21, %s513_s21, %s514_s22  }
   0xf   :  { %s515_s25 = smov [#allocation3]   ;;  %s516_s27 = smov [#allocation8]  }
  0x10   :  { %s20_s26 = sshll.u32 %s515_s25, 4  ;;  %s42_s28 = sshll.u32 %s516_s27, 4  ;;  %s21_s26 = int_to_ptr.vmem [resolvable:$true] %s20_s26  ;;  %s43_s28 = int_to_ptr.vmem [resolvable:$true] %s42_s28 }
  0x11   :  { %s432_s29 = scalar_lea.vmem %s21_s26, 128  ;;  %p437_p6 = scmp.lt.s32.totalorder %s21_s26, %s21_s26 }
  0x12   :  { %p433_p5 = scmp.ne.s32.totalorder %s21_s26, %s432_s29  ;;  %p438_p7 = scmp.lt.s32.totalorder %s432_s29, %s432_s29 }
  0x14   :  { %p439_p8 = por %p438_p7, %p437_p6 }
  0x16   :  { %p440_p9 = pnand %p439_p8, %p433_p5 }
  0x18   :  { %443 = shalt.err (!%p440_p9)
}
  0x19   :  { %23 = dma.hbm_to_vmem [thread:$0]  %s609_s0, 128, %s21_s26, [#allocation4]  }
  0x1a   :  { %s452_s7 = scalar_lea.vmem %s43_s28, 128  ;;  %p457_p11 = scmp.lt.s32.totalorder %s43_s28, %s43_s28 }
  0x1b   :  { %p453_p10 = scmp.ne.s32.totalorder %s43_s28, %s452_s7  ;;  %p458_p12 = scmp.lt.s32.totalorder %s452_s7, %s452_s7 }
  0x1d   :  { %p459_p13 = por %p458_p12, %p457_p11 }
  0x1f   :  { %p460_p0 = pnand %p459_p13, %p453_p10 }
  0x21   :  { %463 = shalt.err (!%p460_p0)
}
  0x22   :  { %45 = dma.hbm_to_vmem [thread:$0]  %s611_s2, 128, %s43_s28, [#allocation7]  }
  0x23   :  { %s517_s9 = smov [#allocation9]  }
  0x24   :  { %s51_s10 = sshll.u32 %s517_s9, 4  ;;  %s52_s10 = int_to_ptr.vmem [resolvable:$true] %s51_s10 }
  0x25   :  { %s472_s11 = scalar_lea.vmem %s52_s10, 2048  ;;  %p477_p2 = scmp.lt.s32.totalorder %s52_s10, %s52_s10 }
  0x26   :  { %p473_p1 = scmp.ne.s32.totalorder %s52_s10, %s472_s11  ;;  %p478_p3 = scmp.lt.s32.totalorder %s472_s11, %s472_s11 }
  0x28   :  { %p479_p4 = por %p478_p3, %p477_p2 }
  0x2a   :  { %p480_p5 = pnand %p479_p4, %p473_p1 }
  0x2c   :  { %483 = shalt.err (!%p480_p5)
}
  0x2d   :  { %57 = dma.hbm_to_vmem [thread:$0]  %s612_s3, 2048, %s52_s10, [#allocation10], %s513_s21, %s513_s21, %s514_s22  }
  0x2e   :  { %504 = dma.done.wait [#allocation4], 128  }
  0x2f   :  { %505 = vsyncadd [#allocation4], 4294967168 }
  0x30   :  { %506 = dma.done.wait [#allocation7], 2176  }
  0x31   :  { %507 = vsyncadd [#allocation7], 4294965120 }
  0x32   :  { %508 = dma.done.wait [#allocation10], 2048  }
  0x33   :  { %509 = vsyncadd [#allocation10], 4294965248  ;;  %v518_v0 = vmov 0.0   ;;  %vm519_vm0 = vmmov 0   ;;  %v88_v1 = vld [vmem:[#allocation6 + $0x78] sm:$0xff]  ;;  %v191_v2 = vld [vmem:[#allocation9 + $0x78] sm:$0xff] }
  0x34   :  { %325 = vmatprep.subr.mxu0 %v518_v0  ;;  %360 = vmatprep.subr.mxu1 %v518_v0  ;;  %v87_v3 = vld [vmem:[#allocation6 + $0x70] sm:$0xff]  ;;  %v190_v4 = vld [vmem:[#allocation9 + $0x70] sm:$0xff]  ;;  %v86_v5 = vld [vmem:[#allocation6 + $0x68] sm:$0xff]  ;;  %s520_s13 = smov [#allocation11]  }
  0x35   :  { %357 = vmatprep.mubr.msk.f32.mxu0 %vm519_vm0, %v518_v0  ;;  %392 = vmatprep.mubr.msk.f32.mxu1 %vm519_vm0, %v518_v0  ;;  %v189_v6 = vld [vmem:[#allocation9 + $0x68] sm:$0xff]  ;;  %v85_v7 = vld [vmem:[#allocation6 + $0x60] sm:$0xff]  ;;  %v188_v8 = vld [vmem:[#allocation9 + $0x60] sm:$0xff]  ;;  %s279_s14 = sshll.u32 %s520_s13, 4  ;;  %s280_s14 = int_to_ptr.vmem [resolvable:$true] %s279_s14 }
  0x36   :  { %326 = vmatpush3.msra.mxu0 %v88_v1  ;;  %361 = vmatpush3.msra.mxu1 %v191_v2  ;;  %v84_v9 = vld [vmem:[#allocation6 + $0x58] sm:$0xff]  ;;  %v187_v10 = vld [vmem:[#allocation9 + $0x58] sm:$0xff]  ;;  %v83_v11 = vld [vmem:[#allocation6 + $0x50] sm:$0xff]  ;;  %s484_s15 = scalar_lea.vmem %s280_s14, 128  ;;  %p489_p7 = scmp.lt.s32.totalorder %s280_s14, %s280_s14 }
  0x37   :  { %327 = vmatprep.subr.mxu0 %v518_v0  ;;  %362 = vmatprep.subr.mxu1 %v518_v0  ;;  %v186_v12 = vld [vmem:[#allocation9 + $0x50] sm:$0xff]  ;;  %v82_v13 = vld [vmem:[#allocation6 + $0x48] sm:$0xff]  ;;  %v185_v14 = vld [vmem:[#allocation9 + $0x48] sm:$0xff]  ;;  %p485_p6 = scmp.ne.s32.totalorder %s280_s14, %s484_s15  ;;  %p490_p8 = scmp.lt.s32.totalorder %s484_s15, %s484_s15 }
  0x38   :  { %328 = vmatpush3.msra.mxu0 %v87_v3  ;;  %363 = vmatpush3.msra.mxu1 %v190_v4  ;;  %v81_v15 = vld [vmem:[#allocation6 + $0x40] sm:$0xff]  ;;  %v184_v16 = vld [vmem:[#allocation9 + $0x40] sm:$0xff]  ;;  %v80_v17 = vld [vmem:[#allocation6 + $0x38] sm:$0xff] }
  0x39   :  { %329 = vmatprep.subr.mxu0 %v518_v0  ;;  %364 = vmatprep.subr.mxu1 %v518_v0  ;;  %v183_v18 = vld [vmem:[#allocation9 + $0x38] sm:$0xff]  ;;  %v79_v19 = vld [vmem:[#allocation6 + $0x30] sm:$0xff]  ;;  %v182_v20 = vld [vmem:[#allocation9 + $0x30] sm:$0xff]  ;;  %p491_p9 = por %p490_p8, %p489_p7 }
  0x3a   :  { %330 = vmatpush3.msra.mxu0 %v86_v5  ;;  %365 = vmatpush3.msra.mxu1 %v189_v6  ;;  %v78_v21 = vld [vmem:[#allocation6 + $0x28] sm:$0xff]  ;;  %v181_v22 = vld [vmem:[#allocation9 + $0x28] sm:$0xff]  ;;  %v77_v23 = vld [vmem:[#allocation6 + $0x20] sm:$0xff] }
  0x3b   :  { %331 = vmatprep.subr.mxu0 %v518_v0  ;;  %366 = vmatprep.subr.mxu1 %v518_v0  ;;  %v180_v24 = vld [vmem:[#allocation9 + $0x20] sm:$0xff]  ;;  %v76_v25 = vld [vmem:[#allocation6 + $0x18] sm:$0xff]  ;;  %v179_v26 = vld [vmem:[#allocation9 + $0x18] sm:$0xff]  ;;  %p492_p10 = pnand %p491_p9, %p485_p6 }
  0x3c   :  { %332 = vmatpush3.msra.mxu0 %v85_v7  ;;  %367 = vmatpush3.msra.mxu1 %v188_v8  ;;  %v75_v27 = vld [vmem:[#allocation6 + $0x10] sm:$0xff]  ;;  %v178_v28 = vld [vmem:[#allocation9 + $0x10] sm:$0xff]  ;;  %v74_v29 = vld [vmem:[#allocation6 + $0x8] sm:$0xff] }
  0x3d   :  { %333 = vmatprep.subr.mxu0 %v518_v0  ;;  %368 = vmatprep.subr.mxu1 %v518_v0  ;;  %v177_v30 = vld [vmem:[#allocation9 + $0x8] sm:$0xff]  ;;  %v73_v31 = vld [vmem:[#allocation6] sm:$0xff]  ;;  %v176_v32 = vld [vmem:[#allocation9] sm:$0xff] }
  0x3e   :  { %334 = vmatpush3.msra.mxu0 %v84_v9  ;;  %369 = vmatpush3.msra.mxu1 %v187_v10  ;;  %v72_v33 = vld [vmem:[#allocation3] sm:$0xff]  ;;  %v175_v34 = vld [vmem:[#allocation8] sm:$0xff] }
  0x3f   :  { %335 = vmatprep.subr.mxu0 %v518_v0  ;;  %370 = vmatprep.subr.mxu1 %v518_v0  ;;  %v290_v37 = vld [vmem:[%s613_s4] ss:$0 sm:$0xff] }
  0x40   :  { %336 = vmatpush3.msra.mxu0 %v83_v11  ;;  %371 = vmatpush3.msra.mxu1 %v186_v12 }
  0x41   :  { %337 = vmatprep.subr.mxu0 %v518_v0  ;;  %372 = vmatprep.subr.mxu1 %v518_v0 }
  0x42   :  { %338 = vmatpush3.msra.mxu0 %v82_v13  ;;  %373 = vmatpush3.msra.mxu1 %v185_v14 }
  0x43   :  { %339 = vmatprep.subr.mxu0 %v518_v0  ;;  %374 = vmatprep.subr.mxu1 %v518_v0 }
  0x44   :  { %340 = vmatpush3.msra.mxu0 %v81_v15  ;;  %375 = vmatpush3.msra.mxu1 %v184_v16 }
  0x45   :  { %341 = vmatprep.subr.mxu0 %v518_v0  ;;  %376 = vmatprep.subr.mxu1 %v518_v0 }
  0x46   :  { %342 = vmatpush3.msra.mxu0 %v80_v17  ;;  %377 = vmatpush3.msra.mxu1 %v183_v18 }
  0x47   :  { %343 = vmatprep.subr.mxu0 %v518_v0  ;;  %378 = vmatprep.subr.mxu1 %v518_v0 }
  0x48   :  { %344 = vmatpush3.msra.mxu0 %v79_v19  ;;  %379 = vmatpush3.msra.mxu1 %v182_v20 }
  0x49   :  { %345 = vmatprep.subr.mxu0 %v518_v0  ;;  %380 = vmatprep.subr.mxu1 %v518_v0 }
  0x4a   :  { %346 = vmatpush3.msra.mxu0 %v78_v21  ;;  %381 = vmatpush3.msra.mxu1 %v181_v22 }
  0x4b   :  { %347 = vmatprep.subr.mxu0 %v518_v0  ;;  %382 = vmatprep.subr.mxu1 %v518_v0 }
  0x4c   :  { %348 = vmatpush3.msra.mxu0 %v77_v23  ;;  %383 = vmatpush3.msra.mxu1 %v180_v24 }
  0x4d   :  { %349 = vmatprep.subr.mxu0 %v518_v0  ;;  %384 = vmatprep.subr.mxu1 %v518_v0 }
  0x4e   :  { %350 = vmatpush3.msra.mxu0 %v76_v25  ;;  %385 = vmatpush3.msra.mxu1 %v179_v26 }
  0x4f   :  { %351 = vmatprep.subr.mxu0 %v518_v0  ;;  %386 = vmatprep.subr.mxu1 %v518_v0 }
  0x50   :  { %352 = vmatpush3.msra.mxu0 %v75_v27  ;;  %387 = vmatpush3.msra.mxu1 %v178_v28 }
  0x51   :  { %353 = vmatprep.subr.mxu0 %v518_v0  ;;  %388 = vmatprep.subr.mxu1 %v518_v0 }
  0x52   :  { %354 = vmatpush3.msra.mxu0 %v74_v29  ;;  %389 = vmatpush3.msra.mxu1 %v177_v30 }
  0x53   :  { %355 = vmatprep.subr.mxu0 %v518_v0  ;;  %390 = vmatprep.subr.mxu1 %v518_v0 }
  0x54   :  { %356 = vmatpush3.msra.mxu0 %v73_v31  ;;  %391 = vmatpush3.msra.mxu1 %v176_v32 }
  0x55   :  { %358 = vmatmul.mubr.f32.vlgmr.msra.gmra.mxu0 %v72_v33  ;;  %393 = vmatmul.mubr.f32.vlgmr.msra.gmra.mxu1 %v175_v34 }
 0x115   :  { %v155_v35 = vpop.f32.mrf.mxu0  ;;  %v258_v36 = vpop.f32.mrf.mxu1 }
 0x116   :  { %v262_v38 = vadd.f32 %v258_v36, %v155_v35 }
 0x117   :  { %v359_v39 = vpop.f32.mrf.mxu0  ;;  %v394_v40 = vpop.f32.mrf.mxu1 }
 0x118   :  { %v270_v41 = vadd.f32 %v290_v37, %v262_v38 }
 0x11a   :  { %v271_v42 = vmax.f32 %v270_v41, 0.0 }
 0x11c   :  { %272 = vst [vmem:[#allocation11] sm:$0xff] %v271_v42 }
 0x11d   :  { %495 = shalt.err (!%p492_p10)
}
 0x11e   :  { %282 = dma.vmem_to_hbm [thread:$0]  %s280_s14, 128, %s614_s5, [#allocation5]  }
 0x11f   :  { %510 = dma.done.wait [#allocation5], 128  }
 0x120   :  { %511 = vsyncadd [#allocation5], 4294967168 }
 0x121   :  { %286 = vsyncpa [#allocation4], 1 }
 0x122   :  { %287 = vsyncpa [#allocation7], 1 }
 0x123   :  { %288 = vsyncpa [#allocation10], 1 }
 0x124   :  { %289 = vsyncpa [#allocation5], 1 }

</bundles_post_ra>
